<compile_context>
chip_gen: v6e
topology: v6e:2x2x1
jax: 0.10.0
libtpu: 0.0.40
codegen_flags: <defaults>
</compile_context>

<pallas_src>
import math
from functools import partial

import jax
import jax.numpy as jnp
import numpy as np
from jax import lax
from jax.experimental import pallas as pl
from jax.experimental.pallas import tpu as pltpu

_EPS = 1e-5
_V7X_VMEM_BYTES = 64 * 1024 * 1024  # smallest physical VMEM per TensorCore


def _nbytes(shape, dtype):
    return int(np.prod(shape)) * np.dtype(dtype).itemsize


def _vmem_limit(buffer_bytes, headroom=4 << 20, floor=8 << 20):
    """Explicit byte accounting + headroom, capped at v7x's 64 MiB VMEM."""
    return int(min(max(buffer_bytes + headroom, floor), _V7X_VMEM_BYTES))


# ----------------------------------------------------------------------------
# Kernels
# ----------------------------------------------------------------------------
def _net4_block_kernel(x_ref, w1_ref, w2_ref, w3_ref, w4_ref, biases_ref,
                       out_ref, *, alpha):
    """Whole batch resident in VMEM; BN over the full batch in one call."""
    b1 = biases_ref[0:1, :]                    # (1, F) fc1 bias
    b2 = biases_ref[1:2, :]                    # (1, F) fc2 bias
    bias3 = biases_ref[2:3, :]                 # (1, F) alpha*(r2 - ||w3_row||^2)

    # fc1 + relu  (x cast to bf16 in-kernel; f32 accumulate & elementwise)
    x = x_ref[...].astype(jnp.bfloat16)
    h = jnp.dot(x, w1_ref[...], preferred_element_type=jnp.float32) + b1
    h = jnp.maximum(h, 0.0)

    # fc2 + relu
    h = jnp.dot(h.astype(jnp.bfloat16), w2_ref[...],
                preferred_element_type=jnp.float32) + b2
    h = jnp.maximum(h, 0.0)

    # BatchNorm1d(affine=False), training mode (biased batch stats, eps=1e-5),
    # fused with the 1/sqrt(F) scale.  One-pass stats, all f32.
    batch, feat = h.shape
    inv_b = 1.0 / float(batch)
    mean = jnp.sum(h, axis=0, keepdims=True) * inv_b
    ex2 = jnp.sum(h * h, axis=0, keepdims=True) * inv_b
    var = ex2 - mean * mean
    scale = lax.rsqrt(var + _EPS) * (1.0 / math.sqrt(float(feat)))
    hn = (h - mean) * scale

    # knn(h, fc3, alpha, r2), bias=False:
    #   bias3 - alpha*||h||^2 + 2*h@W3^T   (factor 2 folded into w3_ref)
    xx = jnp.sum(hn * hn, axis=1, keepdims=True)
    k = bias3 - alpha * xx + jnp.dot(hn.astype(jnp.bfloat16), w3_ref[...],
                                     preferred_element_type=jnp.float32)
    k = jnp.maximum(k, 0.0)

    # fc4 (bias=False) -> (B, 2) f32 stored directly (no lane padding).
    out_ref[...] = jnp.dot(k.astype(jnp.bfloat16), w4_ref[...],
                           preferred_element_type=jnp.float32)


def _net4_pass1_kernel(x_ref, w1_ref, w2_ref, biases_ref,
                       h_ref, sum_ref, sumsq_ref):
    """Batch-tiled pass 1: fc1->relu->fc2->relu; accumulate BN sum / sumsq."""
    x = x_ref[...].astype(jnp.bfloat16)
    h = jnp.dot(x, w1_ref[...], preferred_element_type=jnp.float32) \
        + biases_ref[0:1, :]
    h = jnp.maximum(h, 0.0)
    h = jnp.dot(h.astype(jnp.bfloat16), w2_ref[...],
                preferred_element_type=jnp.float32) + biases_ref[1:2, :]
    h = jnp.maximum(h, 0.0)
    h_ref[...] = h

    @pl.when(pl.program_id(0) == 0)
    def _():
        sum_ref[...] = jnp.zeros_like(sum_ref)
        sumsq_ref[...] = jnp.zeros_like(sumsq_ref)

    sum_ref[...] += jnp.sum(h, axis=0, keepdims=True)
    sumsq_ref[...] += jnp.sum(h * h, axis=0, keepdims=True)


def _net4_pass2_kernel(sum_ref, sumsq_ref, h_ref, w3_ref, w4_ref, biases_ref,
                       out_ref, *, alpha, batch, feat):
    """Batch-tiled pass 2: BN normalize + knn + fc4 (tiles independent)."""
    inv_b = 1.0 / float(batch)
    mean = sum_ref[...] * inv_b
    var = sumsq_ref[...] * inv_b - mean * mean
    scale = lax.rsqrt(var + _EPS) * (1.0 / math.sqrt(float(feat)))
    hn = (h_ref[...] - mean) * scale

    xx = jnp.sum(hn * hn, axis=1, keepdims=True)
    k = biases_ref[2:3, :] - alpha * xx + jnp.dot(
        hn.astype(jnp.bfloat16), w3_ref[...], preferred_element_type=jnp.float32)
    k = jnp.maximum(k, 0.0)
    out_ref[...] = jnp.dot(k.astype(jnp.bfloat16), w4_ref[...],
                           preferred_element_type=jnp.float32)


# ----------------------------------------------------------------------------
# Parameter preparation (one-time; not on the per-step path)
# ----------------------------------------------------------------------------
def prepare_params(params, alpha, r2):
    """PyTorch-layout params -> kernel-ready operands (transposes, bf16 casts,
    bias packing, weight-only knn constant, factor-2 fold).  Runs once."""
    f32, bf16 = jnp.float32, jnp.bfloat16

    w1t = params["w1"].astype(f32).T.astype(bf16)                 # (D_in, F)
    w2t = params["w2"].astype(f32).T.astype(bf16)                 # (F, F)
    # fold the knn cross-term factor 2 into w3 (scale in f32 BEFORE bf16 cast)
    w3t = (2.0 * params["w3"].astype(f32)).T.astype(bf16)         # (F, F)
    w4t = params["w4"].astype(f32).T.astype(bf16)                 # (F, 2)

    # weight-only knn constant: alpha*(r2 - sum(w3^2 over input dim)) -> (F,)
    mm = jnp.sum(params["w3"].astype(f32) ** 2, axis=1)
    bias3 = (alpha * (r2 - mm)).astype(f32)

    biases = jnp.stack([params["b1"].astype(f32),
                        params["b2"].astype(f32),
                        bias3], axis=0)                           # (3, F) f32
    return dict(w1t=w1t, w2t=w2t, w3t=w3t, w4t=w4t, biases=biases)


def _pick_batch_tile(batch):
    """Batch-tile rows for the two-pass path; None -> single resident block."""
    if batch < 1024:
        return None  # whole batch comfortably VMEM-resident; one dispatch wins
    for tb in (512, 1024, 256, 128):   # >=512-row tiles preferred (HBM roofline)
        if batch % tb == 0:
            return tb
    # TODO(synk): non-divisible large batches would need masked BN sum/sumsq
    #             accumulation; fall back to the single-resident-block kernel.
    return None


# ----------------------------------------------------------------------------
# Forward
# ----------------------------------------------------------------------------
@partial(jax.jit, static_argnames=("alpha",))
def net4_forward(x, prep, *, alpha):
    """x: (B, inputs) f32.  prep: output of prepare_params (alpha/r2 baked)."""
    batch, d_in = x.shape
    feat = prep["w2t"].shape[0]
    alpha = float(alpha)
    tb = _pick_batch_tile(batch)

    if tb is None:
        # ---- single resident block: whole-batch BN in one dispatch ----
        need = (_nbytes((batch, d_in), jnp.float32)               # x
                + _nbytes((d_in, feat), jnp.bfloat16)             # w1t
                + 2 * _nbytes((feat, feat), jnp.bfloat16)         # w2t, w3t
                + _nbytes((feat, 2), jnp.bfloat16)                # w4t
                + _nbytes((3, feat), jnp.float32)                 # biases
                + _nbytes((batch, 2), jnp.float32)                # out
                + 3 * _nbytes((batch, feat), jnp.float32))        # h/hn/k temps
        return pl.pallas_call(
            partial(_net4_block_kernel, alpha=alpha),
            out_shape=jax.ShapeDtypeStruct((batch, 2), jnp.float32),
            in_specs=[pl.BlockSpec(memory_space=pltpu.VMEM)] * 6,
            out_specs=pl.BlockSpec(memory_space=pltpu.VMEM),
            compiler_params=pltpu.CompilerParams(
                vmem_limit_bytes=_vmem_limit(need)),
        )(x, prep["w1t"], prep["w2t"], prep["w3t"], prep["w4t"], prep["biases"])

    # ---- batch-tiled two-pass pipeline (production batch sizes) ----
    n_tiles = batch // tb

    # pass 1: fc1 -> relu -> fc2 -> relu per tile; accumulate BN sum / sumsq
    need1 = (2 * _nbytes((tb, d_in), jnp.float32)                 # x tile (x2 buf)
             + 2 * _nbytes((tb, feat), jnp.float32)               # h tile (x2 buf)
             + 2 * (_nbytes((d_in, feat), jnp.bfloat16)
                    + _nbytes((feat, feat), jnp.bfloat16)
                    + _nbytes((3, feat), jnp.float32)
                    + 2 * _nbytes((1, feat), jnp.float32))
             + 2 * _nbytes((tb, feat), jnp.float32))              # live f32 temps
    h_full, bn_sum, bn_sumsq = pl.pallas_call(
        _net4_pass1_kernel,
        grid=(n_tiles,),
        out_shape=(
            jax.ShapeDtypeStruct((batch, feat), jnp.float32),
            jax.ShapeDtypeStruct((1, feat), jnp.float32),
            jax.ShapeDtypeStruct((1, feat), jnp.float32),
        ),
        in_specs=[
            pl.BlockSpec((tb, d_in), lambda i: (i, 0)),
            pl.BlockSpec((d_in, feat), lambda i: (0, 0)),
            pl.BlockSpec((feat, feat), lambda i: (0, 0)),
            pl.BlockSpec((3, feat), lambda i: (0, 0)),
        ],
        out_specs=[
            pl.BlockSpec((tb, feat), lambda i: (i, 0)),
            pl.BlockSpec((1, feat), lambda i: (0, 0)),   # accumulator (resident)
            pl.BlockSpec((1, feat), lambda i: (0, 0)),   # accumulator (resident)
        ],
        compiler_params=pltpu.CompilerParams(
            dimension_semantics=("arbitrary",),          # stats reduce over tiles
            vmem_limit_bytes=_vmem_limit(need1)),
    )(x, prep["w1t"], prep["w2t"], prep["biases"])

    # pass 2: BN normalize + knn + fc4 per tile (independent -> v7x megacore)
    need2 = (2 * _nbytes((tb, feat), jnp.float32)                 # h tile
             + 2 * _nbytes((tb, 2), jnp.float32)                  # out tile
             + 2 * (_nbytes((feat, feat), jnp.bfloat16)
                    + _nbytes((feat, 2), jnp.bfloat16)
                    + _nbytes((3, feat), jnp.float32)
                    + 2 * _nbytes((1, feat), jnp.float32))
             + 2 * _nbytes((tb, feat), jnp.float32))              # hn / k temps
    out = pl.pallas_call(
        partial(_net4_pass2_kernel, alpha=alpha, batch=batch, feat=feat),
        grid=(n_tiles,),
        out_shape=jax.ShapeDtypeStruct((batch, 2), jnp.float32),
        in_specs=[
            pl.BlockSpec((1, feat), lambda i: (0, 0)),
            pl.BlockSpec((1, feat), lambda i: (0, 0)),
            pl.BlockSpec((tb, feat), lambda i: (i, 0)),
            pl.BlockSpec((feat, feat), lambda i: (0, 0)),
            pl.BlockSpec((feat, 2), lambda i: (0, 0)),
            pl.BlockSpec((3, feat), lambda i: (0, 0)),
        ],
        out_specs=pl.BlockSpec((tb, 2), lambda i: (i, 0)),
        compiler_params=pltpu.CompilerParams(
            dimension_semantics=("parallel",),           # shards across v7x TCs
            vmem_limit_bytes=_vmem_limit(need2)),
    )(bn_sum, bn_sumsq, h_full, prep["w3t"], prep["w4t"], prep["biases"])
    return out


# ----------------------------------------------------------------------------
# Synthetic parameters (PyTorch nn.Linear layout)
# ----------------------------------------------------------------------------
def init_params(key, inputs, features):
    ks = jax.random.split(key, 6)

    def u(k, shape, fan_in):
        bound = 1.0 / math.sqrt(float(fan_in))
        return jax.random.uniform(k, shape, jnp.float32, -bound, bound)

    return {
        "w1": u(ks[0], (features, inputs), inputs),      # fc1.weight
        "b1": u(ks[1], (features,), inputs),             # fc1.bias
        "w2": u(ks[2], (features, features), features),  # fc2.weight
        "b2": u(ks[3], (features,), features),           # fc2.bias
        "w3": u(ks[4], (features, features), features),  # fc3.weight (no bias)
        "w4": u(ks[5], (2, features), features),         # fc4.weight (no bias)
    }


if __name__ == "__main__":
    key = jax.random.PRNGKey(0)
    k_x, k_p, k_xb = jax.random.split(key, 3)

    INPUTS, FEATURES = 16, 32
    alpha, r2 = 0.5, 2.0
    params = init_params(k_p, INPUTS, FEATURES)
    prep = prepare_params(params, alpha, r2)

    # Reference 1: pure f32 math matching the PyTorch module (loose tolerance:
    # the kernel rounds matmul operands to bf16).
    def ref_f32(xv):
        h = jnp.maximum(xv @ params["w1"].T + params["b1"], 0.0)
        h = jnp.maximum(h @ params["w2"].T + params["b2"], 0.0)
        m = h.mean(0, keepdims=True)
        v = ((h - m) ** 2).mean(0, keepdims=True)
        h = (h - m) / jnp.sqrt(v + 1e-5)
        h = h / jnp.sqrt(jnp.float32(FEATURES))
        xx = jnp.sum(h * h, 1, keepdims=True)
        mm = jnp.sum(params["w3"] ** 2, 1, keepdims=True).T
        k = alpha * (r2 - mm - xx) + 2.0 * (h @ params["w3"].T)
        k = jnp.maximum(k, 0.0)
        return k @ params["w4"].T

    # Reference 2: same bf16 matmul-operand handling as the kernel (tight).
    def ref_bf16(xv):
        bf, f32 = jnp.bfloat16, jnp.float32
        h = jnp.maximum(jnp.dot(xv.astype(bf), params["w1"].T.astype(bf),
                                preferred_element_type=f32)
                        + params["b1"][None, :], 0.0)
        h = jnp.maximum(jnp.dot(h.astype(bf), params["w2"].T.astype(bf),
                                preferred_element_type=f32)
                        + params["b2"][None, :], 0.0)
        n = xv.shape[0]
        m = jnp.sum(h, 0, keepdims=True) / n
        v = jnp.sum(h * h, 0, keepdims=True) / n - m * m
        h = (h - m) * lax.rsqrt(v + 1e-5) * (1.0 / math.sqrt(FEATURES))
        xx = jnp.sum(h * h, 1, keepdims=True)
        mm = jnp.sum(params["w3"].astype(f32) ** 2, axis=1)[None, :]
        k = alpha * (r2 - mm) - alpha * xx + 2.0 * jnp.dot(
            h.astype(bf), params["w3"].T.astype(bf), preferred_element_type=f32)
        k = jnp.maximum(k, 0.0)
        return jnp.dot(k.astype(bf), params["w4"].T.astype(bf),
                       preferred_element_type=f32)

    # --- small batch -> single-resident-block path ---
    B_small = 8
    x_small = jax.random.normal(k_x, (B_small, INPUTS), dtype=jnp.float32)
    out_small = jax.block_until_ready(net4_forward(x_small, prep, alpha=alpha))
    assert out_small.shape == (B_small, 2)
    assert jnp.allclose(out_small, ref_bf16(x_small), atol=5e-3, rtol=5e-3)
    assert jnp.allclose(out_small, ref_f32(x_small), atol=1e-1, rtol=1e-1)

    # --- large batch -> batch-tiled two-pass path (512-row tiles) ---
    B_big = 1024
    x_big = jax.random.normal(k_xb, (B_big, INPUTS), dtype=jnp.float32)
    out_big = jax.block_until_ready(net4_forward(x_big, prep, alpha=alpha))
    assert out_big.shape == (B_big, 2)
    assert jnp.allclose(out_big, ref_bf16(x_big), atol=5e-3, rtol=5e-3)
    assert jnp.allclose(out_big, ref_f32(x_big), atol=1e-1, rtol=1e-1)

    print("KERNEL_OK")
</pallas_src>

<mosaic_0001>
module attributes {stable_mosaic.version = 11 : i64} {
  func.func @_net4_block_kernel(%arg0: memref<8x16xf32, #tpu.memory_space<vmem>>, %arg1: memref<16x32xbf16, #tpu.memory_space<vmem>>, %arg2: memref<32x32xbf16, #tpu.memory_space<vmem>>, %arg3: memref<32x32xbf16, #tpu.memory_space<vmem>>, %arg4: memref<32x2xbf16, #tpu.memory_space<vmem>>, %arg5: memref<3x32xf32, #tpu.memory_space<vmem>>, %arg6: memref<8x2xf32, #tpu.memory_space<vmem>>) attributes {dimension_semantics = [], scalar_prefetch = 0 : i64, scratch_operands = 0 : i64, tpu.core_type = #tpu.core_type<tc>} {
    %c0 = arith.constant 0 : index
    %c0_0 = arith.constant 0 : index
    %0 = vector.load %arg5[%c0, %c0_0] : memref<3x32xf32, #tpu.memory_space<vmem>>, vector<1x32xf32>
    %c1 = arith.constant 1 : index
    %c0_1 = arith.constant 0 : index
    %1 = vector.load %arg5[%c1, %c0_1] : memref<3x32xf32, #tpu.memory_space<vmem>>, vector<1x32xf32>
    %c2 = arith.constant 2 : index
    %c0_2 = arith.constant 0 : index
    %2 = vector.load %arg5[%c2, %c0_2] : memref<3x32xf32, #tpu.memory_space<vmem>>, vector<1x32xf32>
    %c0_3 = arith.constant 0 : index
    %c0_4 = arith.constant 0 : index
    %3 = vector.load %arg0[%c0_3, %c0_4] : memref<8x16xf32, #tpu.memory_space<vmem>>, vector<8x16xf32>
    %4 = arith.truncf %3 : vector<8x16xf32> to vector<8x16xbf16>
    %c0_5 = arith.constant 0 : index
    %c0_6 = arith.constant 0 : index
    %5 = vector.load %arg1[%c0_5, %c0_6] : memref<16x32xbf16, #tpu.memory_space<vmem>>, vector<16x32xbf16>
    %cst = arith.constant dense<0.000000e+00> : vector<8x32xf32>
    %6 = tpu.matmul %4, %5, %cst {dimension_numbers = #tpu.dot_dimension_numbers<[1], [0], [0], [1], [0, 0, 1, 1], [], []>} : vector<8x16xbf16>, vector<16x32xbf16>, vector<8x32xf32> -> vector<8x32xf32>
    %7 = vector.broadcast %0 : vector<1x32xf32> to vector<8x32xf32>
    %8 = arith.addf %6, %7 : vector<8x32xf32>
    %cst_7 = arith.constant 0.000000e+00 : f32
    %9 = vector.broadcast %cst_7 : f32 to vector<8x32xf32>
    %10 = arith.maximumf %8, %9 : vector<8x32xf32>
    %11 = arith.truncf %10 : vector<8x32xf32> to vector<8x32xbf16>
    %c0_8 = arith.constant 0 : index
    %c0_9 = arith.constant 0 : index
    %12 = vector.load %arg2[%c0_8, %c0_9] : memref<32x32xbf16, #tpu.memory_space<vmem>>, vector<32x32xbf16>
    %cst_10 = arith.constant dense<0.000000e+00> : vector<8x32xf32>
    %13 = tpu.matmul %11, %12, %cst_10 {dimension_numbers = #tpu.dot_dimension_numbers<[1], [0], [0], [1], [0, 0, 1, 1], [], []>} : vector<8x32xbf16>, vector<32x32xbf16>, vector<8x32xf32> -> vector<8x32xf32>
    %14 = vector.broadcast %1 : vector<1x32xf32> to vector<8x32xf32>
    %15 = arith.addf %13, %14 : vector<8x32xf32>
    %cst_11 = arith.constant 0.000000e+00 : f32
    %16 = vector.broadcast %cst_11 : f32 to vector<8x32xf32>
    %17 = arith.maximumf %15, %16 : vector<8x32xf32>
    %cst_12 = arith.constant dense<0.000000e+00> : vector<32xf32>
    %18 = vector.multi_reduction <add>, %17, %cst_12 [0] : vector<8x32xf32> to vector<32xf32>
    %19 = vector.shape_cast %18 : vector<32xf32> to vector<1x32xf32>
    %cst_13 = arith.constant 1.250000e-01 : f32
    %20 = vector.broadcast %cst_13 : f32 to vector<1x32xf32>
    %21 = arith.mulf %19, %20 : vector<1x32xf32>
    %22 = arith.mulf %17, %17 : vector<8x32xf32>
    %cst_14 = arith.constant dense<0.000000e+00> : vector<32xf32>
    %23 = vector.multi_reduction <add>, %22, %cst_14 [0] : vector<8x32xf32> to vector<32xf32>
    %24 = vector.shape_cast %23 : vector<32xf32> to vector<1x32xf32>
    %cst_15 = arith.constant 1.250000e-01 : f32
    %25 = vector.broadcast %cst_15 : f32 to vector<1x32xf32>
    %26 = arith.mulf %24, %25 : vector<1x32xf32>
    %27 = arith.mulf %21, %21 : vector<1x32xf32>
    %28 = arith.subf %26, %27 : vector<1x32xf32>
    %cst_16 = arith.constant 9.99999974E-6 : f32
    %29 = vector.broadcast %cst_16 : f32 to vector<1x32xf32>
    %30 = arith.addf %28, %29 : vector<1x32xf32>
    %31 = math.rsqrt %30 : vector<1x32xf32>
    %cst_17 = arith.constant 0.176776692 : f32
    %32 = vector.broadcast %cst_17 : f32 to vector<1x32xf32>
    %33 = arith.mulf %31, %32 : vector<1x32xf32>
    %34 = vector.broadcast %21 : vector<1x32xf32> to vector<8x32xf32>
    %35 = arith.subf %17, %34 : vector<8x32xf32>
    %36 = vector.broadcast %33 : vector<1x32xf32> to vector<8x32xf32>
    %37 = arith.mulf %35, %36 : vector<8x32xf32>
    %38 = arith.mulf %37, %37 : vector<8x32xf32>
    %cst_18 = arith.constant dense<0.000000e+00> : vector<8xf32>
    %39 = vector.multi_reduction <add>, %38, %cst_18 [1] : vector<8x32xf32> to vector<8xf32>
    %40 = vector.shape_cast %39 : vector<8xf32> to vector<8x1xf32>
    %cst_19 = arith.constant 5.000000e-01 : f32
    %41 = vector.broadcast %cst_19 : f32 to vector<8x1xf32>
    %42 = arith.mulf %41, %40 : vector<8x1xf32>
    %43 = vector.broadcast %2 : vector<1x32xf32> to vector<8x32xf32>
    %44 = vector.broadcast %42 : vector<8x1xf32> to vector<8x32xf32>
    %45 = arith.subf %43, %44 : vector<8x32xf32>
    %46 = arith.truncf %37 : vector<8x32xf32> to vector<8x32xbf16>
    %c0_20 = arith.constant 0 : index
    %c0_21 = arith.constant 0 : index
    %47 = vector.load %arg3[%c0_20, %c0_21] : memref<32x32xbf16, #tpu.memory_space<vmem>>, vector<32x32xbf16>
    %cst_22 = arith.constant dense<0.000000e+00> : vector<8x32xf32>
    %48 = tpu.matmul %46, %47, %cst_22 {dimension_numbers = #tpu.dot_dimension_numbers<[1], [0], [0], [1], [0, 0, 1, 1], [], []>} : vector<8x32xbf16>, vector<32x32xbf16>, vector<8x32xf32> -> vector<8x32xf32>
    %49 = arith.addf %45, %48 : vector<8x32xf32>
    %cst_23 = arith.constant 0.000000e+00 : f32
    %50 = vector.broadcast %cst_23 : f32 to vector<8x32xf32>
    %51 = arith.maximumf %49, %50 : vector<8x32xf32>
    %52 = arith.truncf %51 : vector<8x32xf32> to vector<8x32xbf16>
    %c0_24 = arith.constant 0 : index
    %c0_25 = arith.constant 0 : index
    %53 = vector.load %arg4[%c0_24, %c0_25] : memref<32x2xbf16, #tpu.memory_space<vmem>>, vector<32x2xbf16>
    %cst_26 = arith.constant dense<0.000000e+00> : vector<8x2xf32>
    %54 = tpu.matmul %52, %53, %cst_26 {dimension_numbers = #tpu.dot_dimension_numbers<[1], [0], [0], [1], [0, 0, 1, 1], [], []>} : vector<8x32xbf16>, vector<32x2xbf16>, vector<8x2xf32> -> vector<8x2xf32>
    %c0_27 = arith.constant 0 : index
    %c0_28 = arith.constant 0 : index
    %55 = vector.load %arg6[%c0_27, %c0_28] : memref<8x2xf32, #tpu.memory_space<vmem>>, vector<8x2xf32>
    tpu.vector_store %arg6[%c0_27, %c0_28], %54 {strides = array<i32>} : memref<8x2xf32, #tpu.memory_space<vmem>>, vector<8x2xf32>,
    return
  }
}

</mosaic_0001>

<bundles_post_ra>
// kernel: net4_forward.1
= control target key start
LH: loop header
LB: loop body
LE: loop exit
PB: predicated region body
PF: predicated region fallthrough
CT: control target
= control target key end

     0   :  { %11 = vsyncpa [#allocation3], 0  ;;  %s586_s0 = inlined_call_operand.hbm [shape: f32[8,16], index: 0, kind: input, shape index: {}]   ;;  %s587_s1 = inlined_call_operand.hbm [shape: bf16[16,32], index: 1, kind: input, shape index: {}]   ;;  %s588_s2 = inlined_call_operand.vmem [shape: bf16[32,32], index: 2, kind: input, shape index: {}]   ;;  %s589_s3 = inlined_call_operand.hbm [shape: bf16[32,32], index: 3, kind: input, shape index: {}]   ;;  %s590_s4 = inlined_call_operand.vmem [shape: bf16[32,2], index: 4, kind: input, shape index: {}]   ;;  %s591_s5 = inlined_call_operand.vmem [shape: f32[3,32], index: 5, kind: input, shape index: {}]   ;;  %s592_s6 = inlined_call_operand.vmem [shape: f32[8,2], index: 6, kind: output, shape index: {}]  }
   0x1   :  { %12 = vsyncpa [#allocation5], 0  ;;  %s490_s21 = smov [#allocation4]  }
   0x2   :  { %s28_s22 = sshll.u32 %s490_s21, 4  ;;  %s29_s22 = int_to_ptr.vmem [resolvable:$true] %s28_s22 }
   0x3   :  { %s434_s23 = scalar_lea.vmem %s29_s22, 128  ;;  %p439_p1 = scmp.lt.s32.totalorder %s29_s22, %s29_s22 }
   0x4   :  { %p435_p0 = scmp.ne.s32.totalorder %s29_s22, %s434_s23  ;;  %p440_p2 = scmp.lt.s32.totalorder %s434_s23, %s434_s23 }
   0x6   :  { %p441_p3 = por %p440_p2, %p439_p1 }
   0x8   :  { %p442_p4 = pnand %p441_p3, %p435_p0 }
   0xa   :  { %445 = shalt.err (!%p442_p4)
}
   0xb   :  { %s491_s24 = smov 64   ;;  %s492_s25 = smov 4  }
   0xc   :  { %34 = dma.hbm_to_vmem [thread:$0]  %s587_s1, 128, %s29_s22, [#allocation5], %s491_s24, %s491_s24, %s492_s25  }
   0xd   :  { %s493_s28 = smov [#allocation2]   ;;  %s494_s30 = smov [#allocation6]  }
   0xe   :  { %s19_s29 = sshll.u32 %s493_s28, 4  ;;  %s42_s7 = sshll.u32 %s494_s30, 4  ;;  %s20_s29 = int_to_ptr.vmem [resolvable:$true] %s19_s29  ;;  %s43_s7 = int_to_ptr.vmem [resolvable:$true] %s42_s7 }
   0xf   :  { %s454_s8 = scalar_lea.vmem %s20_s29, 128  ;;  %p459_p6 = scmp.lt.s32.totalorder %s20_s29, %s20_s29 }
  0x10   :  { %p455_p5 = scmp.ne.s32.totalorder %s20_s29, %s454_s8  ;;  %p460_p7 = scmp.lt.s32.totalorder %s454_s8, %s454_s8 }
  0x12   :  { %p461_p8 = por %p460_p7, %p459_p6 }
  0x14   :  { %p462_p9 = pnand %p461_p8, %p455_p5 }
  0x16   :  { %465 = shalt.err (!%p462_p9)
}
  0x17   :  { %22 = dma.hbm_to_vmem [thread:$0]  %s586_s0, 128, %s20_s29, [#allocation3]  }
  0x18   :  { %s474_s11 = scalar_lea.vmem %s43_s7, 256  ;;  %p479_p11 = scmp.lt.s32.totalorder %s43_s7, %s43_s7 }
  0x19   :  { %p475_p10 = scmp.ne.s32.totalorder %s43_s7, %s474_s11  ;;  %p480_p12 = scmp.lt.s32.totalorder %s474_s11, %s474_s11 }
  0x1b   :  { %p481_p13 = por %p480_p12, %p479_p11 }
  0x1d   :  { %p482_p0 = pnand %p481_p13, %p475_p10 }
  0x1f   :  { %485 = shalt.err (!%p482_p0)
}
  0x20   :  { %48 = dma.hbm_to_vmem [thread:$0]  %s589_s3, 256, %s43_s7, [#allocation5], %s491_s24, %s491_s24, %s492_s25  }
  0x21   :  { %486 = dma.done.wait [#allocation3], 128  }
  0x22   :  { %487 = vsyncadd [#allocation3], 4294967168 }
  0x23   :  { %488 = dma.done.wait [#allocation5], 384  }
  0x24   :  { %489 = vsyncadd [#allocation5], 4294966912  ;;  %v495_v0 = vmov 0.0   ;;  %vm496_vm0 = vmmov 0   ;;  %v417_v1 = vld [vmem:[#allocation4] sm:$0xff]   ;;  %v66_v2 = vld [vmem:[#allocation2] sm:$0xff] }
  0x25   :  { %380 = vmatprep.subr.bf16.mxu0 %v495_v0  ;;  %382 = vmatprep.mubr.msk.bf16.mxu0 %vm496_vm0, %v495_v0  ;;  %vm80_vm1 = vcmask 130048   ;;  %v67_v3 = vpack.c.bf16 %v66_v2, %v66_v2  ;;  %v418_v4 = vld [vmem:[%s588_s2 + $0x8] sm:$0xff]   ;;  %v419_v5 = vld [vmem:[%s588_s2] sm:$0xff]   ;;  %vm146_vm2 = vcmask 261120   ;;  %v420_v14 = vld [vmem:[#allocation6 + $0x8] sm:$0xff]   ;;  %vm347_vm3 = vcmask 15360  }
  0x26   :  { %386 = vmatprep.subr.bf16.mxu1 %v495_v0  ;;  %390 = vmatprep.mubr.msk.bf16.mxu1 %vm496_vm0, %v495_v0  ;;  %v355_v6 = vld [vmem:[%s591_s5] ss:$0 sm:$0xff]  ;;  %v421_v15 = vld [vmem:[#allocation6] sm:$0xff]   ;;  %v358_v16 = vld [vmem:[%s591_s5 + $0x1] ss:$0 sm:$0xff] }
  0x27   :  { %381 = vmatpush3.bf16.msra.mxu0 %v417_v1  ;;  %387 = vmatpush3.bf16.msra.mxu1 %v418_v4  ;;  %v422_v50 = vld [vmem:[%s590_s4 + $0x8] sm:$0xff]   ;;  %v423_v51 = vld [vmem:[%s590_s4] sm:$0xff]  }
  0x28   :  { %394 = vmatprep.subr.bf16.mxu0 %v495_v0  ;;  %388 = vmatprep.subr.bf16.mxu1 %v495_v0  ;;  %v362_v54 = vld [vmem:[%s591_s5 + $0x2] ss:$0 sm:$0xff] }
  0x2a   :  { %383 = vmatmul.mubr.msk.bf16.vlgmr.msra.gmra.mxu0 %vm80_vm1, %v67_v3 }
  0x2b   :  { %398 = vmatprep.mubr.msk.bf16.mxu0 %vm496_vm0, %v495_v0  ;;  %389 = vmatpush3.bf16.msra.mxu1 %v419_v5 }
  0x2c   :  { %402 = vmatprep.subr.bf16.mxu1 %v495_v0  ;;  %395 = vmatpush3.bf16.msra.mxu0 %v420_v14 }
  0x2d   :  { %396 = vmatprep.subr.bf16.mxu0 %v495_v0 }
  0x30   :  { %397 = vmatpush3.bf16.msra.mxu0 %v421_v15 }
  0xea   :  { %v118_v7 = vpop.f32.mrf.mxu0 }
  0xeb   :  { %v119_v8 = vadd.f32 %v355_v6, %v118_v7 }
  0xec   :  { %v384_v9 = vpop.f32.mrf.mxu0 }
  0xed   :  { %v124_v10 = vmax.f32 %v119_v8, 0.0 }
  0xee   :  { %v121_v11 = vpop.f32.mrf.mxu0 }
  0xef   :  { %v125_v12 = vpack.c.bf16 %v124_v10, %v124_v10 }
  0xf0   :  { %v385_v13 = vpop.f32.mrf.mxu0 }
  0xf1   :  { %391 = vmatmul.mubr.msk.bf16.vlgmr.msra.gmra.mxu1 %vm146_vm2, %v125_v12 }
  0xf2   :  { %406 = vmatprep.mubr.msk.bf16.mxu1 %vm496_vm0, %v495_v0  ;;  %403 = vmatpush3.bf16.msra.mxu1 %v422_v50 }
  0xf3   :  { %404 = vmatprep.subr.bf16.mxu1 %v495_v0 }
  0xf6   :  { %405 = vmatpush3.bf16.msra.mxu1 %v423_v51 }
 0x1b1   :  { %v184_v17 = vpop.f32.mrf.mxu1 }
 0x1b2   :  { %v185_v18 = vadd.f32 %v358_v16, %v184_v17 }
 0x1b3   :  { %v392_v19 = vpop.f32.mrf.mxu1 }
 0x1b4   :  { %v190_v20 = vmax.f32 %v185_v18, 0.0 }
 0x1b5   :  { %v187_v21 = vpop.f32.mrf.mxu1 }
 0x1b6   :  { %v191_v22 = vsel %vm146_vm2, %v190_v20, 0.0  ;;  %v199_v23 = vmul.f32 %v190_v20, %v190_v20 }
 0x1b7   :  { %v192_v24 = vrot.slane %v191_v22, 4  ;;  %v393_v25 = vpop.f32.mrf.mxu1 }
 0x1b8   :  { %v200_v26 = vsel %vm146_vm2, %v199_v23, 0.0 }
 0x1b9   :  { %v193_v27 = vadd.f32 %v192_v24, %v191_v22  ;;  %v201_v28 = vrot.slane %v200_v26, 4 }
 0x1bb   :  { %v194_v29 = vrot.slane %v193_v27, 2  ;;  %v202_v30 = vadd.f32 %v201_v28, %v200_v26 }
 0x1bd   :  { %v195_v31 = vadd.f32 %v194_v29, %v193_v27  ;;  %v203_v32 = vrot.slane %v202_v30, 2 }
 0x1bf   :  { %v196_v33 = vrot.slane %v195_v31, 1  ;;  %v204_v34 = vadd.f32 %v203_v32, %v202_v30 }
 0x1c1   :  { %v197_v35 = vadd.f32 %v196_v33, %v195_v31  ;;  %v205_v36 = vrot.slane %v204_v34, 1 }
 0x1c3   :  { %v198_v37 = vmul.f32 0.125, %v197_v35  ;;  %v206_v38 = vadd.f32 %v205_v36, %v204_v34 }
 0x1c5   :  { %v207_v39 = vmul.f32 0.125, %v206_v38  ;;  %v208_v40 = vmul.f32 %v198_v37, %v198_v37  ;;  %v213_v45 = vsub.f32 %v190_v20, %v198_v37 }
 0x1c7   :  { %v209_v41 = vsub.f32 %v207_v39, %v208_v40 }
 0x1c9   :  { %v210_v42 = vadd.f32 1e-05, %v209_v41 }
 0x1cb   :  { %424 = vrsqrt.f32 %v210_v42 }
 0x1d8   :  { %v425_v43 = vpop.eup %424 }
 0x1d9   :  { %v212_v44 = vmul.f32 0.17677669, %v425_v43 }
 0x1db   :  { %v214_v46 = vmul.f32 %v213_v45, %v212_v44 }
 0x1dd   :  { %v225_v47 = vpack.c.bf16 %v214_v46, %v214_v46  ;;  %v215_v48 = vmul.f32 %v214_v46, %v214_v46 }
 0x1df   :  { %399 = vmatmul.mubr.msk.bf16.vlgmr.msra.gmra.mxu0 %vm146_vm2, %v225_v47  ;;  %v216_v49 = vsel %vm146_vm2, %v215_v48, 0.0 }
 0x1e0   :  { %217 = vadd.xlane.f32.xlu0 %v216_v49 }
 0x269   :  { %v218_v52 = vpop.xlane.xlu0 %217 }
 0x26a   :  { %v219_v53 = vmul.f32 0.5, %v218_v52 }
 0x26c   :  { %v224_v55 = vsub.f32 %v362_v54, %v219_v53 }
 0x29f   :  { %v279_v56 = vpop.f32.mrf.mxu0 }
 0x2a0   :  { %v285_v57 = vadd.f32 %v279_v56, %v224_v55 }
 0x2a1   :  { %v400_v58 = vpop.f32.mrf.mxu0 }
 0x2a2   :  { %v286_v59 = vmax.f32 %v285_v57, 0.0 }
 0x2a3   :  { %v282_v60 = vpop.f32.mrf.mxu0 }
 0x2a4   :  { %v287_v61 = vpack.c.bf16 %v286_v59, %v286_v59 }
 0x2a5   :  { %v401_v62 = vpop.f32.mrf.mxu0 }
 0x2a6   :  { %407 = vmatmul.mubr.msk.bf16.vlgmr.msra.gmra.mxu1 %vm146_vm2, %v287_v61 }
 0x366   :  { %v341_v63 = vpop.f32.mrf.mxu1 }
 0x367   :  { %348 = vst.msk [vmem:[%s592_s6] sm:$0xff] %vm347_vm3, %v341_v63 }
 0x368   :  { %v408_v0 = vpop.f32.mrf.mxu1 }
 0x36a   :  { %v344_v1 = vpop.f32.mrf.mxu1 }
 0x36c   :  { %v409_v2 = vpop.f32.mrf.mxu1 }
 0x36d   :  { %353 = vsyncpa [#allocation3], 1 }
 0x36e   :  { %354 = vsyncpa [#allocation5], 1 }

</bundles_post_ra>
